<compile_context>
chip_gen: v6e
topology: v6e:2x2x1
jax: 0.10.0
libtpu: 0.0.40
codegen_flags: <defaults>
</compile_context>

<pallas_src>
import functools
import math

import jax
import jax.numpy as jnp
from jax import lax
from jax.experimental import pallas as pl
from jax.experimental.pallas import tpu as pltpu

_LN2 = math.log(2.0)
_LANE = 128
_SUBLANE = 8
_MAX_TILE_ROWS = 512  # 512*128*4B = 256 KiB per input per buffer -> ~2 MiB total


def _loss_kernel(pred_ref, target_ref, sys_ref, sub_ref, out_ref, acc_ref, *,
                 batch, tile_rows, base_size, scaling_power, physics_weight):
    t = pl.program_id(0)

    @pl.when(t == 0)
    def _init():
        acc_ref[0, 0] = jnp.float32(0.0)

    pred = pred_ref[...]          # (tile_rows, 128) f32
    target = target_ref[...]
    sys_sz = sys_ref[...]
    sub_sz = sub_ref[...]

    # Global element index of each slot in this tile -> tail mask.
    row = lax.broadcasted_iota(jnp.int32, pred.shape, 0)
    lane = lax.broadcasted_iota(jnp.int32, pred.shape, 1)
    gidx = (t * tile_rows + row) * _LANE + lane
    mask = gidx < batch

    # Sanitize padded slots so exp/log/sqrt stay finite before masking.
    sys_safe = jnp.where(mask, sys_sz, 1.0)
    tgt_safe = jnp.where(mask, target, 1.0)

    # 1) predicted absolute entropy (strictly positive, so the lower-bound
    #    term smoothL1(max(0, pe) - pe) is identically zero and omitted).
    pred_entropy = jnp.exp(pred) * sys_safe

    # 2) upper-bound violation: smoothL1(min(ub, pe) - pe) == smoothL1 of
    #    over = max(pe - ub, 0)  (diff is always <= 0, |diff| = over).
    upper_bound = jnp.minimum(sub_sz, sys_safe - sub_sz) * _LN2
    over = jnp.maximum(pred_entropy - upper_bound, 0.0)
    physics_loss = jnp.where(over < 1.0, 0.5 * over * over, over - 0.5)

    # 3) size-weighted MSE on log(S/N).
    log_target = jnp.log((tgt_safe + 1e-10) / sys_safe)
    d = pred - log_target
    base_loss = d * d

    x = sys_safe * (1.0 / base_size)
    if scaling_power == 1.5:
        size_weight = x * jnp.sqrt(x)       # x^1.5 without exp+log
    elif scaling_power == 1.0:
        size_weight = x
    elif scaling_power == 2.0:
        size_weight = x * x
    else:
        size_weight = x ** scaling_power    # general fallback

    total = base_loss * size_weight + physics_weight * physics_loss
    total = jnp.where(mask, total, 0.0)

    acc_ref[0, 0] += jnp.sum(total)

    @pl.when(t == pl.num_programs(0) - 1)
    def _finalize():
        out_ref[0, 0] = acc_ref[0, 0] / batch


def physical_scale_aware_loss(pred_log_s_over_n, target_s, system_size, subsystem_size,
                              base_size=4, scaling_power=1.5, physics_weight=1.0):
    batch = pred_log_s_over_n.shape[0]

    # Rows of 128 lanes needed; tile rows: multiple of 8 sublanes, capped.
    rows_needed = -(-batch // _LANE)
    tile_rows = max(_SUBLANE,
                    min(_MAX_TILE_ROWS,
                        ((rows_needed + _SUBLANE - 1) // _SUBLANE) * _SUBLANE))
    num_tiles = -(-rows_needed // tile_rows)
    rows_pad = num_tiles * tile_rows
    n_pad = rows_pad * _LANE

    def prep(x):
        x = x.astype(jnp.float32)
        if n_pad != batch:                 # pad only if not already aligned
            x = jnp.pad(x, (0, n_pad - batch))
        return x.reshape(rows_pad, _LANE)  # sublane-dense 2-D view

    args = [prep(a) for a in
            (pred_log_s_over_n, target_s, system_size, subsystem_size)]

    kernel = functools.partial(
        _loss_kernel,
        batch=batch,
        tile_rows=tile_rows,
        base_size=float(base_size),
        scaling_power=float(scaling_power),
        physics_weight=float(physics_weight),
    )

    tile_spec = pl.BlockSpec((tile_rows, _LANE), lambda t: (t, 0))
    out = pl.pallas_call(
        kernel,
        out_shape=jax.ShapeDtypeStruct((1, 1), jnp.float32),
        grid_spec=pltpu.PrefetchScalarGridSpec(
            num_scalar_prefetch=0,
            grid=(num_tiles,),
            in_specs=[tile_spec] * 4,
            out_specs=pl.BlockSpec((1, 1), lambda t: (0, 0),
                                   memory_space=pltpu.MemorySpace.SMEM),
            scratch_shapes=[pltpu.SMEM((1, 1), jnp.float32)],
        ),
        compiler_params=pltpu.CompilerParams(
            dimension_semantics=("arbitrary",),   # reduction axis
            vmem_limit_bytes=32 * 1024 * 1024,    # safe on v5e/v6e/v7x
        ),
    )(*args)
    return out[0, 0]


def _smooth_l1(diff):
    ad = jnp.abs(diff)
    return jnp.where(ad < 1.0, 0.5 * diff * diff, ad - 0.5)


def _reference_loss(pred, target, sys_sz, sub_sz,
                    base_size=4, scaling_power=1.5, physics_weight=1.0):
    # pure-JAX mirror of the PyTorch forward
    pred_entropy = jnp.exp(pred) * sys_sz
    upper = jnp.minimum(sub_sz, sys_sz - sub_sz) * _LN2
    lo = _smooth_l1(jnp.maximum(0.0, pred_entropy) - pred_entropy)
    hi = _smooth_l1(jnp.minimum(upper, pred_entropy) - pred_entropy)
    physics = lo + hi
    log_target = jnp.log((target + 1e-10) / sys_sz)
    base = (pred - log_target) ** 2
    w = (sys_sz / base_size) ** scaling_power
    return jnp.mean(base * w + physics_weight * physics)


if __name__ == "__main__":
    key = jax.random.PRNGKey(0)
    k1, k2, k3, k4 = jax.random.split(key, 4)

    batch = 8
    # predicted log(S/N) around -1..0
    pred = jax.random.normal(k1, (batch,), dtype=jnp.float32) * 0.5 - 0.5
    # system sizes between 6 and 12
    system_size = jax.random.randint(k2, (batch,), 6, 13).astype(jnp.float32)
    # subsystem sizes between 1 and system_size-1
    frac = jax.random.uniform(k3, (batch,), minval=0.2, maxval=0.8)
    subsystem_size = jnp.clip(jnp.round(system_size * frac), 1, system_size - 1)
    # positive target entropies
    target_s = jax.random.uniform(k4, (batch,), minval=0.1, maxval=3.0)

    loss = physical_scale_aware_loss(pred, target_s, system_size, subsystem_size)
    loss = jax.block_until_ready(loss)

    ref = _reference_loss(pred, target_s, system_size, subsystem_size)
    assert jnp.allclose(loss, ref, rtol=1e-5, atol=1e-5), (loss, ref)

    print("KERNEL_OK")
</pallas_src>

<mosaic_0001>
module attributes {stable_mosaic.version = 11 : i64} {
  func.func @_loss_kernel(%arg0: i32, %arg1: memref<8x128xf32, #tpu.memory_space<vmem>>, %arg2: memref<8x128xf32, #tpu.memory_space<vmem>>, %arg3: memref<8x128xf32, #tpu.memory_space<vmem>>, %arg4: memref<8x128xf32, #tpu.memory_space<vmem>>, %arg5: memref<1x1xf32, #tpu.memory_space<smem>>, %arg6: memref<1x1xf32, #tpu.memory_space<smem>>) attributes {dimension_semantics = [#tpu.dimension_semantics<arbitrary>], iteration_bounds = array<i64: 1>, scalar_prefetch = 0 : i64, scratch_operands = 1 : i64, tpu.core_type = #tpu.core_type<tc>, window_params = [{transform_indices = @transform_0, window_bounds = array<i64: 8, 128>}, {transform_indices = @transform_1, window_bounds = array<i64: 8, 128>}, {transform_indices = @transform_2, window_bounds = array<i64: 8, 128>}, {transform_indices = @transform_3, window_bounds = array<i64: 8, 128>}, {transform_indices = @transform_4, window_bounds = array<i64: 1, 1>}]} {
    %c0_i32 = arith.constant 0 : i32
    %0 = arith.cmpi eq, %arg0, %c0_i32 : i32
    %1 = arith.extui %0 : i1 to i32
    %c0_i32_0 = arith.constant 0 : i32
    %2 = arith.cmpi ne, %1, %c0_i32_0 : i32
    scf.if %2 {
      %cst_26 = arith.constant 0.000000e+00 : f32
      %c0_27 = arith.constant 0 : index
      %c0_28 = arith.constant 0 : index
      %64 = memref.load %arg6[%c0_27, %c0_28] : memref<1x1xf32, #tpu.memory_space<smem>>
      memref.store %cst_26, %arg6[%c0_27, %c0_28] : memref<1x1xf32, #tpu.memory_space<smem>>
    } else {
    }
    %c0 = arith.constant 0 : index
    %c0_1 = arith.constant 0 : index
    %3 = vector.load %arg1[%c0, %c0_1] : memref<8x128xf32, #tpu.memory_space<vmem>>, vector<8x128xf32>
    %c0_2 = arith.constant 0 : index
    %c0_3 = arith.constant 0 : index
    %4 = vector.load %arg2[%c0_2, %c0_3] : memref<8x128xf32, #tpu.memory_space<vmem>>, vector<8x128xf32>
    %c0_4 = arith.constant 0 : index
    %c0_5 = arith.constant 0 : index
    %5 = vector.load %arg3[%c0_4, %c0_5] : memref<8x128xf32, #tpu.memory_space<vmem>>, vector<8x128xf32>
    %c0_6 = arith.constant 0 : index
    %c0_7 = arith.constant 0 : index
    %6 = vector.load %arg4[%c0_6, %c0_7] : memref<8x128xf32, #tpu.memory_space<vmem>>, vector<8x128xf32>
    %7 = tpu.iota {dimensions = array<i32: 0>} : vector<8x128xi32>
    %8 = tpu.iota {dimensions = array<i32: 1>} : vector<8x128xi32>
    %c8_i32 = arith.constant 8 : i32
    %9 = arith.muli %arg0, %c8_i32 : i32
    %10 = vector.broadcast %9 : i32 to vector<8x128xi32>
    %11 = arith.addi %10, %7 : vector<8x128xi32>
    %c128_i32 = arith.constant 128 : i32
    %12 = vector.broadcast %c128_i32 : i32 to vector<8x128xi32>
    %13 = arith.muli %11, %12 : vector<8x128xi32>
    %14 = arith.addi %13, %8 : vector<8x128xi32>
    %c8_i32_8 = arith.constant 8 : i32
    %15 = vector.broadcast %c8_i32_8 : i32 to vector<8x128xi32>
    %16 = arith.cmpi slt, %14, %15 : vector<8x128xi32>
    %cst = arith.constant 1.000000e+00 : f32
    %17 = vector.broadcast %cst : f32 to vector<8x128xf32>
    %18 = arith.select %16, %5, %17 : vector<8x128xi1>, vector<8x128xf32>
    %cst_9 = arith.constant 1.000000e+00 : f32
    %19 = vector.broadcast %cst_9 : f32 to vector<8x128xf32>
    %20 = arith.select %16, %4, %19 : vector<8x128xi1>, vector<8x128xf32>
    %21 = math.exp %3 : vector<8x128xf32>
    %22 = arith.mulf %21, %18 : vector<8x128xf32>
    %23 = arith.subf %18, %6 : vector<8x128xf32>
    %24 = arith.minimumf %6, %23 : vector<8x128xf32>
    %cst_10 = arith.constant 0.693147182 : f32
    %25 = vector.broadcast %cst_10 : f32 to vector<8x128xf32>
    %26 = arith.mulf %24, %25 : vector<8x128xf32>
    %27 = arith.subf %22, %26 : vector<8x128xf32>
    %cst_11 = arith.constant 0.000000e+00 : f32
    %28 = vector.broadcast %cst_11 : f32 to vector<8x128xf32>
    %29 = arith.maximumf %27, %28 : vector<8x128xf32>
    %cst_12 = arith.constant 1.000000e+00 : f32
    %30 = vector.broadcast %cst_12 : f32 to vector<8x128xf32>
    %31 = arith.cmpf olt, %29, %30 : vector<8x128xf32>
    %cst_13 = arith.constant 5.000000e-01 : f32
    %32 = vector.broadcast %cst_13 : f32 to vector<8x128xf32>
    %33 = arith.mulf %32, %29 : vector<8x128xf32>
    %34 = arith.mulf %33, %29 : vector<8x128xf32>
    %cst_14 = arith.constant 5.000000e-01 : f32
    %35 = vector.broadcast %cst_14 : f32 to vector<8x128xf32>
    %36 = arith.subf %29, %35 : vector<8x128xf32>
    %37 = arith.select %31, %34, %36 : vector<8x128xi1>, vector<8x128xf32>
    %cst_15 = arith.constant 1.000000e-10 : f32
    %38 = vector.broadcast %cst_15 : f32 to vector<8x128xf32>
    %39 = arith.addf %20, %38 : vector<8x128xf32>
    %40 = arith.divf %39, %18 : vector<8x128xf32>
    %41 = math.log %40 : vector<8x128xf32>
    %42 = arith.subf %3, %41 : vector<8x128xf32>
    %43 = arith.mulf %42, %42 : vector<8x128xf32>
    %cst_16 = arith.constant 2.500000e-01 : f32
    %44 = vector.broadcast %cst_16 : f32 to vector<8x128xf32>
    %45 = arith.mulf %18, %44 : vector<8x128xf32>
    %46 = math.sqrt %45 : vector<8x128xf32>
    %47 = arith.mulf %45, %46 : vector<8x128xf32>
    %48 = arith.mulf %43, %47 : vector<8x128xf32>
    %cst_17 = arith.constant 1.000000e+00 : f32
    %49 = vector.broadcast %cst_17 : f32 to vector<8x128xf32>
    %50 = arith.mulf %49, %37 : vector<8x128xf32>
    %51 = arith.addf %48, %50 : vector<8x128xf32>
    %cst_18 = arith.constant 0.000000e+00 : f32
    %52 = vector.broadcast %cst_18 : f32 to vector<8x128xf32>
    %53 = arith.select %16, %51, %52 : vector<8x128xi1>, vector<8x128xf32>
    %c0_19 = arith.constant 0 : index
    %c0_20 = arith.constant 0 : index
    %54 = memref.load %arg6[%c0_19, %c0_20] : memref<1x1xf32, #tpu.memory_space<smem>>
    %55 = vector.shape_cast %53 : vector<8x128xf32> to vector<1x8x128xf32>
    %cst_21 = arith.constant dense<0.000000e+00> : vector<1xf32>
    %56 = vector.multi_reduction <add>, %55, %cst_21 [1, 2] : vector<1x8x128xf32> to vector<1xf32>
    %57 = vector.shape_cast %56 : vector<1xf32> to vector<1x1x1xf32>
    %58 = vector.extract %57[0, 0, 0] : f32 from vector<1x1x1xf32>
    %59 = arith.addf %54, %58 : f32
    %c0_22 = arith.constant 0 : index
    %c0_23 = arith.constant 0 : index
    %60 = memref.load %arg6[%c0_22, %c0_23] : memref<1x1xf32, #tpu.memory_space<smem>>
    memref.store %59, %arg6[%c0_22, %c0_23] : memref<1x1xf32, #tpu.memory_space<smem>>
    %c0_i32_24 = arith.constant 0 : i32
    %61 = arith.cmpi eq, %arg0, %c0_i32_24 : i32
    %62 = arith.extui %61 : i1 to i32
    %c0_i32_25 = arith.constant 0 : i32
    %63 = arith.cmpi ne, %62, %c0_i32_25 : i32
    scf.if %63 {
      %c0_26 = arith.constant 0 : index
      %c0_27 = arith.constant 0 : index
      %64 = memref.load %arg6[%c0_26, %c0_27] : memref<1x1xf32, #tpu.memory_space<smem>>
      %cst_28 = arith.constant 8.000000e+00 : f32
      %65 = arith.divf %64, %cst_28 : f32
      %c0_29 = arith.constant 0 : index
      %c0_30 = arith.constant 0 : index
      %66 = memref.load %arg5[%c0_29, %c0_30] : memref<1x1xf32, #tpu.memory_space<smem>>
      memref.store %65, %arg5[%c0_29, %c0_30] : memref<1x1xf32, #tpu.memory_space<smem>>
    } else {
    }
    return
  }
  func.func @transform_0(%arg0: i32) -> (i32, i32) {
    %c0_i32 = arith.constant 0 : i32
    %c0_i32_0 = arith.constant 0 : i32
    return %arg0, %c0_i32 : i32, i32
  }
  func.func @transform_1(%arg0: i32) -> (i32, i32) {
    %c0_i32 = arith.constant 0 : i32
    %c0_i32_0 = arith.constant 0 : i32
    return %arg0, %c0_i32 : i32, i32
  }
  func.func @transform_2(%arg0: i32) -> (i32, i32) {
    %c0_i32 = arith.constant 0 : i32
    %c0_i32_0 = arith.constant 0 : i32
    return %arg0, %c0_i32 : i32, i32
  }
  func.func @transform_3(%arg0: i32) -> (i32, i32) {
    %c0_i32 = arith.constant 0 : i32
    %c0_i32_0 = arith.constant 0 : i32
    return %arg0, %c0_i32 : i32, i32
  }
  func.func @transform_4(%arg0: i32) -> (i32, i32) {
    %c0_i32 = arith.constant 0 : i32
    %c0_i32_0 = arith.constant 0 : i32
    %c0_i32_1 = arith.constant 0 : i32
    return %c0_i32, %c0_i32_0 : i32, i32
  }
}

</mosaic_0001>

<bundles_post_ra>
// kernel: tpu_custom_call.1
= control target key start
LH: loop header
LB: loop body
LE: loop exit
PB: predicated region body
PF: predicated region fallthrough
CT: control target
= control target key end

     0   :  { %9 = vsyncpa [#allocation4], 0  ;;  %s317_s0 = inlined_call_operand.hbm [shape: f32[8,128], index: 0, kind: input, shape index: {}]   ;;  %s318_s1 = inlined_call_operand.hbm [shape: f32[8,128], index: 1, kind: input, shape index: {}]   ;;  %s319_s2 = inlined_call_operand.hbm [shape: f32[8,128], index: 2, kind: input, shape index: {}]   ;;  %s320_s3 = inlined_call_operand.hbm [shape: f32[8,128], index: 3, kind: input, shape index: {}]   ;;  %s321_s4 = inlined_call_operand.hbm [shape: f32[1,1], index: 4, kind: output, shape index: {}]  }
   0x1   :  { %10 = vsyncpa [#allocation7], 0 }
   0x2   :  { %11 = vsyncpa [#allocation10], 0 }
   0x3   :  { %12 = vsyncpa [#allocation5], 0  ;;  %s269_s15 = smov [#allocation6]   ;;  %s270_s17 = smov [#allocation3]  }
   0x4   :  { %s29_s16 = sshll.u32 %s269_s15, 4  ;;  %s19_s18 = sshll.u32 %s270_s17, 4  ;;  %s30_s16 = int_to_ptr.vmem [resolvable:$true] %s29_s16  ;;  %s20_s18 = int_to_ptr.vmem [resolvable:$true] %s19_s18 }
   0x5   :  { %s181_s19 = scalar_lea.vmem %s30_s16, 128  ;;  %p186_p1 = scmp.lt.s32.totalorder %s30_s16, %s30_s16 }
   0x6   :  { %p182_p0 = scmp.ne.s32.totalorder %s30_s16, %s181_s19  ;;  %p187_p2 = scmp.lt.s32.totalorder %s181_s19, %s181_s19 }
   0x8   :  { %p188_p3 = por %p187_p2, %p186_p1 }
   0xa   :  { %p189_p4 = pnand %p188_p3, %p182_p0 }
   0xc   :  { %192 = shalt.err (!%p189_p4)
}
   0xd   :  { %32 = dma.hbm_to_vmem [thread:$0]  %s318_s1, 128, %s30_s16, [#allocation7]  }
   0xe   :  { %s201_s22 = scalar_lea.vmem %s20_s18, 128  ;;  %p206_p6 = scmp.lt.s32.totalorder %s20_s18, %s20_s18 }
   0xf   :  { %p202_p5 = scmp.ne.s32.totalorder %s20_s18, %s201_s22  ;;  %p207_p7 = scmp.lt.s32.totalorder %s201_s22, %s201_s22 }
  0x11   :  { %p208_p8 = por %p207_p7, %p206_p6 }
  0x13   :  { %p209_p9 = pnand %p208_p8, %p202_p5 }
  0x15   :  { %212 = shalt.err (!%p209_p9)
}
  0x16   :  { %22 = dma.hbm_to_vmem [thread:$0]  %s317_s0, 128, %s20_s18, [#allocation4]  }
  0x17   :  { %s271_s25 = smov [#allocation8]   ;;  %s272_s27 = smov [#allocation9]  }
  0x18   :  { %s39_s26 = sshll.u32 %s271_s25, 4  ;;  %s49_s28 = sshll.u32 %s272_s27, 4  ;;  %s40_s26 = int_to_ptr.vmem [resolvable:$true] %s39_s26  ;;  %s50_s28 = int_to_ptr.vmem [resolvable:$true] %s49_s28 }
  0x19   :  { %s221_s29 = scalar_lea.vmem %s40_s26, 128  ;;  %p226_p11 = scmp.lt.s32.totalorder %s40_s26, %s40_s26 }
  0x1a   :  { %p222_p10 = scmp.ne.s32.totalorder %s40_s26, %s221_s29  ;;  %p227_p12 = scmp.lt.s32.totalorder %s221_s29, %s221_s29 }
  0x1c   :  { %p228_p13 = por %p227_p12, %p226_p11 }
  0x1e   :  { %p229_p0 = pnand %p228_p13, %p222_p10 }
  0x20   :  { %232 = shalt.err (!%p229_p0)
}
  0x21   :  { %42 = dma.hbm_to_vmem [thread:$0]  %s319_s2, 128, %s40_s26, [#allocation7]  }
  0x22   :  { %s241_s5 = scalar_lea.vmem %s50_s28, 128  ;;  %p246_p2 = scmp.lt.s32.totalorder %s50_s28, %s50_s28 }
  0x23   :  { %p242_p1 = scmp.ne.s32.totalorder %s50_s28, %s241_s5  ;;  %p247_p3 = scmp.lt.s32.totalorder %s241_s5, %s241_s5 }
  0x25   :  { %p248_p4 = por %p247_p3, %p246_p2 }
  0x27   :  { %p249_p5 = pnand %p248_p4, %p242_p1 }
  0x29   :  { %252 = shalt.err (!%p249_p5)
}
  0x2a   :  { %52 = dma.hbm_to_vmem [thread:$0]  %s320_s3, 128, %s50_s28, [#allocation10]  }
  0x2b   :  { %261 = dma.done.wait [#allocation4], 128  }
  0x2c   :  { %262 = vsyncadd [#allocation4], 4294967168 }
  0x2d   :  { %263 = dma.done.wait [#allocation7], 256  }
  0x2e   :  { %264 = vsyncadd [#allocation7], 4294967040 }
  0x2f   :  { %265 = dma.done.wait [#allocation10], 128  }
  0x30   :  { %266 = vsyncadd [#allocation10], 4294967168  ;;  %v75_v0 = vlaneseq  ;;  %v71_v5 = vld [vmem:[#allocation3] sm:$0xff]  ;;  %v73_v6 = vld [vmem:[#allocation8] sm:$0xff]  ;;  %s273_s7 = smov [#allocation11]  }
  0x31   :  { %v87_v7 = vmul.f32 1.442695, %v71_v5  ;;  %v72_v10 = vld [vmem:[#allocation6] sm:$0xff]  ;;  %v74_v11 = vld [vmem:[#allocation9] sm:$0xff] }
  0x32   :  { %v76_v1 = vshrl.u32 %v75_v0, 7  ;;  %v78_v2 = vand.u32 127, %v75_v0 }
  0x33   :  { %165 = vpow2.f32 %v87_v7 }
  0x34   :  { %v82_v3 = vmul.u32 128, %v76_v1 }
  0x36   :  { %v83_v4 = vadd.s32 %v82_v3, %v78_v2 }
  0x38   :  { %vm84_vm0 = vcmp.lt.s32.totalorder %v83_v4, 8 }
  0x39   :  { %v85_v8 = vsel %vm84_vm0, %v73_v6, 1.0  ;;  %v86_v12 = vsel %vm84_vm0, %v72_v10, 1.0 }
  0x3a   :  { %167 = vrcp.f32 %v85_v8  ;;  %v107_v9 = vmul.f32 0.25, %v85_v8  ;;  %v90_v13 = vsub.f32 %v85_v8, %v74_v11  ;;  %v100_v14 = vadd.f32 1e-10, %v86_v12 }
  0x3c   :  { %169 = vrsqrt.f32 %v107_v9  ;;  %v91_v15 = vmin.f32 %v74_v11, %v90_v13  ;;  %vm110_vm1 = vcmp.eq.f32.partialorder %v107_v9, inf  ;;  %v113_v25 = vand.u32 2147483648, %v107_v9 }
  0x3d   :  { %vm112_vm2 = vcmp.eq.f32.partialorder %v107_v9, 0.0 }
  0x3e   :  { %v92_v20 = vmul.f32 0.6931472, %v91_v15 }
  0x40   :  { %v166_v16 = vpop.eup %165 }
  0x41   :  { %v89_v19 = vmul.f32 %v166_v16, %v85_v8 }
  0x43   :  { %v93_v22 = vsub.f32 %v89_v19, %v92_v20 }
  0x45   :  { %v94_v24 = vmax.f32 %v93_v22, 0.0 }
  0x47   :  { %v168_v17 = vpop.eup %167  ;;  %v96_v27 = vmul.f32 0.5, %v94_v24  ;;  %v157_v32 = vadd.f32 -0.5, %v94_v24  ;;  %vm95_vm3 = vcmp.lt.f32.partialorder %v94_v24, 1.0 }
  0x48   :  { %v102_v18 = vmul.f32 %v168_v17, %v100_v14 }
  0x49   :  { %v170_v21 = vpop.eup %169  ;;  %v97_v31 = vmul.f32 %v96_v27, %v94_v24 }
  0x4a   :  { %171 = vlog2.f32 %v102_v18  ;;  %v109_v23 = vmul.f32 %v170_v21, %v107_v9 }
  0x4b   :  { %v99_v36 = vsel %vm95_vm3, %v97_v31, %v157_v32 }
  0x4c   :  { %v111_v26 = vsel %vm110_vm1, %v107_v9, %v109_v23 }
  0x4d   :  { %v114_v29 = vsel %vm112_vm2, %v113_v25, %v111_v26 }
  0x4e   :  { %v115_v34 = vmul.f32 %v114_v29, %v107_v9 }
  0x57   :  { %v172_v28 = vpop.eup %171 }
  0x58   :  { %v104_v30 = vmul.f32 0.6931472, %v172_v28 }
  0x5a   :  { %v105_v33 = vsub.f32 %v71_v5, %v104_v30 }
  0x5c   :  { %v106_v35 = vmul.f32 %v105_v33, %v105_v33 }
  0x5e   :  { %v116_v37 = vmul.f32 %v115_v34, %v106_v35 }
  0x60   :  { %v117_v38 = vadd.f32 %v116_v37, %v99_v36 }
  0x62   :  { %v118_v39 = vsel %vm84_vm0, %v117_v38, 0.0 }
  0x63   :  { %120 = vadd.xlane.f32.xlu0 %v118_v39 }
  0xec   :  { %v121_v40 = vpop.xlane.xlu0 %120 }
  0xed   :  { %v122_v41 = vrot.slane %v121_v40, 4 }
  0xef   :  { %v123_v42 = vadd.f32 %v122_v41, %v121_v40 }
  0xf1   :  { %v124_v43 = vrot.slane %v123_v42, 2 }
  0xf3   :  { %v125_v44 = vadd.f32 %v124_v43, %v123_v42 }
  0xf5   :  { %v126_v45 = vrot.slane %v125_v44, 1 }
  0xf7   :  { %v127_v46 = vadd.f32 %v126_v45, %v125_v44 }
  0xf9   :  { %158 = vpush %v127_v46 }
 0x12a   :  { %s159_s2 = spop %158 }
 0x12b   :  { %s138_s3 = smul.f32 0.125, %s159_s2 }
 0x12d   :  { %140 = sst [smem:[#allocation11]] %s138_s3 }
 0x12e   :  { %148 = dma.smem_to_hbm %s273_s7, 16, %s321_s4, [#allocation5]  }
 0x12f   :  { %267 = dma.done.wait [#allocation5], 16  }
 0x130   :  { %268 = vsyncadd [#allocation5], 4294967280 }
 0x131   :  { %152 = sfence }
 0x132   :  { %153 = vsyncpa [#allocation4], 1 }
 0x133   :  { %154 = vsyncpa [#allocation7], 1 }
 0x134   :  { %155 = vsyncpa [#allocation10], 1 }
 0x135   :  { %156 = vsyncpa [#allocation5], 1 }

</bundles_post_ra>
